<compile_context>
chip_gen: v5e
topology: v5e:2x2
jax: 0.10.0
libtpu: 0.0.40
codegen_flags: <defaults>
</compile_context>

<pallas_src>
import math

import numpy as np
import jax
import jax.numpy as jnp
from jax.experimental import pallas as pl
from jax.experimental.pallas import tpu as pltpu

VDIM = 1024       # self.vdim (bert-large hidden size)
LABEL_NUM = 2     # label_num


def ranker_head_kernel(cls_ref, w_ref, b_ref, out_ref, pred_ref):
    # cls_ref : (TB, VDIM)      producer dtype (f32 here)
    # w_ref   : (VDIM, 2)       same dtype as cls (full-array block, stays resident)
    # b_ref   : (1, 2)          f32
    # out_ref : (TB, 2)         f32   log-softmax probs
    # pred_ref: (TB, 1)         i32   fused argmax
    logits = jnp.dot(cls_ref[...], w_ref[...], preferred_element_type=jnp.float32)
    logits = logits + b_ref[...]

    # log_softmax over the label axis (dim=1 in the PyTorch module), all in f32.
    m = jnp.max(logits, axis=-1, keepdims=True)
    lse = m + jnp.log(jnp.sum(jnp.exp(logits - m), axis=-1, keepdims=True))
    out_ref[...] = (logits - lse).astype(out_ref.dtype)

    # Fused 2-class argmax: index 1 iff logits[:,1] > logits[:,0] (ties -> 0, like torch.argmax).
    pred_ref[...] = (logits[:, 1:2] > logits[:, 0:1]).astype(jnp.int32)


def passage_ranker_head(cls_vecs, w, b, *, max_tb=1024):
    """cls_vecs: [B, VDIM]; w: [VDIM, 2]; b: [2].
    Returns (log_probs [B, 2] f32, preds [B] int32)."""
    B = cls_vecs.shape[0]
    assert cls_vecs.shape[1] == VDIM

    # Only the tiny (8 KiB) weight matrix is cast; cls streams through untouched.
    w_k = w.astype(cls_vecs.dtype)
    b_f32 = b.astype(jnp.float32).reshape(1, LABEL_NUM)

    # Batch tile selection:
    #  * small batches: one full-extent block (no 8-row divisibility requirement needed).
    #  * large batches: ~max_tb rows per step (multiple of 8), even step count so both
    #    v7x TensorCores get work; last block may be partial (OOB writes are dropped).
    if B <= max_tb:
        tb = B
    else:
        n_steps = pl.cdiv(B, max_tb)
        if n_steps % 2:
            n_steps += 1
        tb = ((pl.cdiv(B, n_steps) + 7) // 8) * 8
    grid = pl.cdiv(B, tb)

    log_probs, preds = pl.pallas_call(
        ranker_head_kernel,
        out_shape=(
            jax.ShapeDtypeStruct((B, LABEL_NUM), jnp.float32),
            jax.ShapeDtypeStruct((B, 1), jnp.int32),
        ),
        grid_spec=pl.GridSpec(
            grid=(grid,),
            in_specs=[
                pl.BlockSpec((tb, VDIM), lambda i: (i, 0)),          # batch-tiled cls
                pl.BlockSpec((VDIM, LABEL_NUM), lambda i: (0, 0)),   # weights stay resident
                pl.BlockSpec((1, LABEL_NUM), lambda i: (0, 0)),      # bias stays resident
            ],
            out_specs=(
                pl.BlockSpec((tb, LABEL_NUM), lambda i: (i, 0)),
                pl.BlockSpec((tb, 1), lambda i: (i, 0)),
            ),
        ),
        compiler_params=pltpu.CompilerParams(
            dimension_semantics=("parallel",)),
    )(cls_vecs, w_k, b_f32)

    return log_probs, preds[:, 0]


def passage_ranker_forward(cls_vecs, w, b):
    """Mirrors PassageRanker.forward: returns (labels, all_probs)."""
    log_probs, preds = passage_ranker_head(cls_vecs, w, b)
    # One bulk device->host transfer (no per-element int(p) syncs).
    preds_host = np.asarray(jax.device_get(preds))
    labels = ['relevant' if p == 0 else 'irrelevant' for p in preds_host.tolist()]
    return labels, log_probs


def _reference(cls_vecs, w, b):
    logits = jnp.dot(cls_vecs, w, precision=jax.lax.Precision.HIGHEST) + b
    return jax.nn.log_softmax(logits, axis=1)


if __name__ == "__main__":
    key = jax.random.PRNGKey(0)
    k_cls, k_w, k_b, k_cls2 = jax.random.split(key, 4)

    # nn.Linear(1024, 2) default init: U(-1/sqrt(fan_in), 1/sqrt(fan_in))
    bound = 1.0 / math.sqrt(VDIM)
    w = jax.random.uniform(k_w, (VDIM, LABEL_NUM), minval=-bound, maxval=bound,
                           dtype=jnp.float32)
    b = jax.random.uniform(k_b, (LABEL_NUM,), minval=-bound, maxval=bound,
                           dtype=jnp.float32)

    # --- primary small-batch test (stand-in for BERT pooled output[1]) ---
    B = 8
    cls_vecs = jax.random.normal(k_cls, (B, VDIM), dtype=jnp.float32)

    labels, log_probs = passage_ranker_forward(cls_vecs, w, b)
    log_probs = jax.block_until_ready(log_probs)

    ref = _reference(cls_vecs, w, b)
    assert log_probs.shape == (B, LABEL_NUM)
    assert jnp.allclose(log_probs, ref, atol=2e-3, rtol=2e-3), "mismatch vs reference"

    ref_labels = ['relevant' if p == 0 else 'irrelevant'
                  for p in np.asarray(jnp.argmax(ref, axis=1)).tolist()]
    assert len(labels) == B
    assert labels == ref_labels, "fused argmax disagrees with reference"

    # --- secondary test: multi-step grid with a ragged (partial) last block ---
    B2 = 40
    cls2 = jax.random.normal(k_cls2, (B2, VDIM), dtype=jnp.float32)
    lp2, preds2 = passage_ranker_head(cls2, w, b, max_tb=16)   # grid of 3, last block partial
    lp2 = jax.block_until_ready(lp2)
    ref2 = _reference(cls2, w, b)
    assert lp2.shape == (B2, LABEL_NUM)
    assert jnp.allclose(lp2, ref2, atol=2e-3, rtol=2e-3), "ragged-tile mismatch vs reference"
    assert jnp.array_equal(preds2, jnp.argmax(ref2, axis=1).astype(jnp.int32)), \
        "ragged-tile argmax mismatch"

    print("KERNEL_OK")
</pallas_src>

<mosaic_0001>
module attributes {stable_mosaic.version = 11 : i64} {
  func.func @ranker_head_kernel(%arg0: i32, %arg1: memref<8x1024xf32, #tpu.memory_space<vmem>>, %arg2: memref<1024x2xf32, #tpu.memory_space<vmem>>, %arg3: memref<1x2xf32, #tpu.memory_space<vmem>>, %arg4: memref<8x2xf32, #tpu.memory_space<vmem>>, %arg5: memref<8x1xi32, #tpu.memory_space<vmem>>) attributes {dimension_semantics = [#tpu.dimension_semantics<parallel>], iteration_bounds = array<i64: 1>, scalar_prefetch = 0 : i64, scratch_operands = 0 : i64, tpu.core_type = #tpu.core_type<tc>, window_params = [{transform_indices = @transform_0, window_bounds = array<i64: 8, 1024>}, {pipeline_mode = #tpu.pipeline_mode<synchronous>, transform_indices = @transform_1, window_bounds = array<i64: 1024, 2>}, {pipeline_mode = #tpu.pipeline_mode<synchronous>, transform_indices = @transform_2, window_bounds = array<i64: 1, 2>}, {transform_indices = @transform_3, window_bounds = array<i64: 8, 2>}, {transform_indices = @transform_4, window_bounds = array<i64: 8, 1>}]} {
    %c0 = arith.constant 0 : index
    %c0_0 = arith.constant 0 : index
    %0 = vector.load %arg1[%c0, %c0_0] : memref<8x1024xf32, #tpu.memory_space<vmem>>, vector<8x1024xf32>
    %c0_1 = arith.constant 0 : index
    %c0_2 = arith.constant 0 : index
    %1 = vector.load %arg2[%c0_1, %c0_2] : memref<1024x2xf32, #tpu.memory_space<vmem>>, vector<1024x2xf32>
    %cst = arith.constant dense<0.000000e+00> : vector<8x2xf32>
    %2 = tpu.matmul %0, %1, %cst {dimension_numbers = #tpu.dot_dimension_numbers<[1], [0], [0], [1], [0, 0, 1, 1], [], []>} : vector<8x1024xf32>, vector<1024x2xf32>, vector<8x2xf32> -> vector<8x2xf32>
    %c0_3 = arith.constant 0 : index
    %c0_4 = arith.constant 0 : index
    %3 = vector.load %arg3[%c0_3, %c0_4] : memref<1x2xf32, #tpu.memory_space<vmem>>, vector<1x2xf32>
    %4 = vector.broadcast %3 : vector<1x2xf32> to vector<8x2xf32>
    %5 = arith.addf %2, %4 : vector<8x2xf32>
    %cst_5 = arith.constant dense<0xFF800000> : vector<8xf32>
    %6 = vector.multi_reduction <maximumf>, %5, %cst_5 [1] : vector<8x2xf32> to vector<8xf32>
    %7 = vector.shape_cast %6 : vector<8xf32> to vector<8x1xf32>
    %8 = vector.broadcast %7 : vector<8x1xf32> to vector<8x2xf32>
    %9 = arith.subf %5, %8 : vector<8x2xf32>
    %10 = math.exp %9 : vector<8x2xf32>
    %cst_6 = arith.constant dense<0.000000e+00> : vector<8xf32>
    %11 = vector.multi_reduction <add>, %10, %cst_6 [1] : vector<8x2xf32> to vector<8xf32>
    %12 = vector.shape_cast %11 : vector<8xf32> to vector<8x1xf32>
    %13 = math.log %12 : vector<8x1xf32>
    %14 = arith.addf %7, %13 : vector<8x1xf32>
    %15 = vector.broadcast %14 : vector<8x1xf32> to vector<8x2xf32>
    %16 = arith.subf %5, %15 : vector<8x2xf32>
    %c0_7 = arith.constant 0 : index
    %c0_8 = arith.constant 0 : index
    %17 = vector.load %arg4[%c0_7, %c0_8] : memref<8x2xf32, #tpu.memory_space<vmem>>, vector<8x2xf32>
    tpu.vector_store %arg4[%c0_7, %c0_8], %16 {strides = array<i32>} : memref<8x2xf32, #tpu.memory_space<vmem>>, vector<8x2xf32>,
    %18 = vector.extract_strided_slice %5 {offsets = [0, 1], sizes = [8, 1], strides = [1, 1]} : vector<8x2xf32> to vector<8x1xf32>
    %19 = vector.extract_strided_slice %5 {offsets = [0, 0], sizes = [8, 1], strides = [1, 1]} : vector<8x2xf32> to vector<8x1xf32>
    %20 = arith.cmpf ogt, %18, %19 : vector<8x1xf32>
    %21 = arith.extui %20 : vector<8x1xi1> to vector<8x1xi32>
    %c0_9 = arith.constant 0 : index
    %c0_10 = arith.constant 0 : index
    %22 = vector.load %arg5[%c0_9, %c0_10] : memref<8x1xi32, #tpu.memory_space<vmem>>, vector<8x1xi32>
    tpu.vector_store %arg5[%c0_9, %c0_10], %21 {strides = array<i32>} : memref<8x1xi32, #tpu.memory_space<vmem>>, vector<8x1xi32>,
    return
  }
  func.func @transform_0(%arg0: i32) -> (i32, i32) {
    %c0_i32 = arith.constant 0 : i32
    %c0_i32_0 = arith.constant 0 : i32
    return %arg0, %c0_i32 : i32, i32
  }
  func.func @transform_1(%arg0: i32) -> (i32, i32) {
    %c0_i32 = arith.constant 0 : i32
    %c0_i32_0 = arith.constant 0 : i32
    %c0_i32_1 = arith.constant 0 : i32
    return %c0_i32, %c0_i32_0 : i32, i32
  }
  func.func @transform_2(%arg0: i32) -> (i32, i32) {
    %c0_i32 = arith.constant 0 : i32
    %c0_i32_0 = arith.constant 0 : i32
    %c0_i32_1 = arith.constant 0 : i32
    return %c0_i32, %c0_i32_0 : i32, i32
  }
  func.func @transform_3(%arg0: i32) -> (i32, i32) {
    %c0_i32 = arith.constant 0 : i32
    %c0_i32_0 = arith.constant 0 : i32
    return %arg0, %c0_i32 : i32, i32
  }
  func.func @transform_4(%arg0: i32) -> (i32, i32) {
    %c0_i32 = arith.constant 0 : i32
    %c0_i32_0 = arith.constant 0 : i32
    return %arg0, %c0_i32 : i32, i32
  }
}

</mosaic_0001>

<bundles_post_ra>
// kernel: tpu_custom_call.1
= control target key start
LH: loop header
LB: loop body
LE: loop exit
PB: predicated region body
PF: predicated region fallthrough
CT: control target
= control target key end

     0   :  { %vm316_vm0 = vcmask 15360   ;;  %vm339_vm2 = vcmask 7168   ;;  %s805_s1 = inlined_call_operand.vmem [shape: f32[1024,2], index: 1, kind: input, shape index: {}]   ;;  %s806_s2 = inlined_call_operand.vmem [shape: f32[1,2], index: 2, kind: input, shape index: {}]   ;;  %s807_s0 = inlined_call_operand.vmem [shape: f32[8,1024], index: 0, kind: input, shape index: {}]   ;;  %s808_s3 = inlined_call_operand.vmem [shape: f32[8,2], index: 3, kind: output, shape index: {0}]   ;;  %s809_s4 = inlined_call_operand.vmem [shape: s32[8,1], index: 4, kind: output, shape index: {1}]  }
   0x1   :  { %v71_v0 = vld [vmem:[%s805_s1 + $0x178] sm:$0xff]  ;;  %v70_v2 = vld [vmem:[%s805_s1 + $0x170] sm:$0xff]  ;;  %v69_v6 = vld [vmem:[%s805_s1 + $0x168] sm:$0xff] }
   0x2   :  { %v39_v1 = vld [vmem:[%s805_s1 + $0x78] sm:$0xff]  ;;  %196 = vmatpush.msra.mxu2 %v71_v0  ;;  %v38_v4 = vld [vmem:[%s805_s1 + $0x70] sm:$0xff]  ;;  %v37_v8 = vld [vmem:[%s805_s1 + $0x68] sm:$0xff] }
   0x3   :  { %156 = vmatpush.msra.mxu0 %v39_v1  ;;  %v87_v3 = vld [vmem:[%s805_s1 + $0x1f8] sm:$0xff]  ;;  %v86_v7 = vld [vmem:[%s805_s1 + $0x1f0] sm:$0xff]  ;;  %v85_v10 = vld [vmem:[%s805_s1 + $0x1e8] sm:$0xff] }
   0x4   :  { %v55_v5 = vld [vmem:[%s805_s1 + $0xf8] sm:$0xff]  ;;  %216 = vmatpush.msra.mxu3 %v87_v3  ;;  %197 = vmatpush.msra.mxu2 %v70_v2  ;;  %v54_v9 = vld [vmem:[%s805_s1 + $0xf0] sm:$0xff]  ;;  %v68_v11 = vld [vmem:[%s805_s1 + $0x160] sm:$0xff] }
   0x5   :  { %176 = vmatpush.msra.mxu1 %v55_v5  ;;  %157 = vmatpush.msra.mxu0 %v38_v4  ;;  %v36_v12 = vld [vmem:[%s805_s1 + $0x60] sm:$0xff]  ;;  %v53_v13 = vld [vmem:[%s805_s1 + $0xe8] sm:$0xff]  ;;  %v67_v16 = vld [vmem:[%s805_s1 + $0x158] sm:$0xff] }
   0x6   :  { %217 = vmatpush.msra.mxu3 %v86_v7  ;;  %198 = vmatpush.msra.mxu2 %v69_v6  ;;  %v84_v14 = vld [vmem:[%s805_s1 + $0x1e0] sm:$0xff]  ;;  %v35_v17 = vld [vmem:[%s805_s1 + $0x58] sm:$0xff]  ;;  %v66_v20 = vld [vmem:[%s805_s1 + $0x150] sm:$0xff] }
   0x7   :  { %177 = vmatpush.msra.mxu1 %v54_v9  ;;  %158 = vmatpush.msra.mxu0 %v37_v8  ;;  %v52_v15 = vld [vmem:[%s805_s1 + $0xe0] sm:$0xff]  ;;  %v83_v18 = vld [vmem:[%s805_s1 + $0x1d8] sm:$0xff]  ;;  %v34_v21 = vld [vmem:[%s805_s1 + $0x50] sm:$0xff] }
   0x8   :  { %218 = vmatpush.msra.mxu3 %v85_v10  ;;  %199 = vmatpush.msra.mxu2 %v68_v11  ;;  %v51_v19 = vld [vmem:[%s805_s1 + $0xd8] sm:$0xff]  ;;  %v82_v22 = vld [vmem:[%s805_s1 + $0x1d0] sm:$0xff]  ;;  %v65_v24 = vld [vmem:[%s805_s1 + $0x148] sm:$0xff] }
   0x9   :  { %178 = vmatpush.msra.mxu1 %v53_v13  ;;  %159 = vmatpush.msra.mxu0 %v36_v12  ;;  %v50_v23 = vld [vmem:[%s805_s1 + $0xd0] sm:$0xff]  ;;  %v33_v25 = vld [vmem:[%s805_s1 + $0x48] sm:$0xff]  ;;  %v64_v28 = vld [vmem:[%s805_s1 + $0x140] sm:$0xff] }
   0xa   :  { %219 = vmatpush.msra.mxu3 %v84_v14  ;;  %200 = vmatpush.msra.mxu2 %v67_v16  ;;  %v81_v26 = vld [vmem:[%s805_s1 + $0x1c8] sm:$0xff]  ;;  %v32_v29 = vld [vmem:[%s805_s1 + $0x40] sm:$0xff]  ;;  %v63_v32 = vld [vmem:[%s805_s1 + $0x138] sm:$0xff] }
   0xb   :  { %179 = vmatpush.msra.mxu1 %v52_v15  ;;  %160 = vmatpush.msra.mxu0 %v35_v17  ;;  %v49_v27 = vld [vmem:[%s805_s1 + $0xc8] sm:$0xff]  ;;  %v80_v30 = vld [vmem:[%s805_s1 + $0x1c0] sm:$0xff]  ;;  %v31_v33 = vld [vmem:[%s805_s1 + $0x38] sm:$0xff] }
   0xc   :  { %220 = vmatpush.msra.mxu3 %v83_v18  ;;  %201 = vmatpush.msra.mxu2 %v66_v20  ;;  %v48_v31 = vld [vmem:[%s805_s1 + $0xc0] sm:$0xff]  ;;  %v79_v34 = vld [vmem:[%s805_s1 + $0x1b8] sm:$0xff]  ;;  %v62_v36 = vld [vmem:[%s805_s1 + $0x130] sm:$0xff] }
   0xd   :  { %180 = vmatpush.msra.mxu1 %v51_v19  ;;  %161 = vmatpush.msra.mxu0 %v34_v21  ;;  %v47_v35 = vld [vmem:[%s805_s1 + $0xb8] sm:$0xff]  ;;  %v30_v37 = vld [vmem:[%s805_s1 + $0x30] sm:$0xff]  ;;  %v61_v40 = vld [vmem:[%s805_s1 + $0x128] sm:$0xff] }
   0xe   :  { %221 = vmatpush.msra.mxu3 %v82_v22  ;;  %202 = vmatpush.msra.mxu2 %v65_v24  ;;  %v78_v38 = vld [vmem:[%s805_s1 + $0x1b0] sm:$0xff]  ;;  %v29_v41 = vld [vmem:[%s805_s1 + $0x28] sm:$0xff]  ;;  %v60_v44 = vld [vmem:[%s805_s1 + $0x120] sm:$0xff] }
   0xf   :  { %181 = vmatpush.msra.mxu1 %v50_v23  ;;  %162 = vmatpush.msra.mxu0 %v33_v25  ;;  %v46_v39 = vld [vmem:[%s805_s1 + $0xb0] sm:$0xff]  ;;  %v77_v42 = vld [vmem:[%s805_s1 + $0x1a8] sm:$0xff]  ;;  %v28_v45 = vld [vmem:[%s805_s1 + $0x20] sm:$0xff] }
  0x10   :  { %222 = vmatpush.msra.mxu3 %v81_v26  ;;  %203 = vmatpush.msra.mxu2 %v64_v28  ;;  %v45_v43 = vld [vmem:[%s805_s1 + $0xa8] sm:$0xff]  ;;  %v76_v46 = vld [vmem:[%s805_s1 + $0x1a0] sm:$0xff]  ;;  %v59_v48 = vld [vmem:[%s805_s1 + $0x118] sm:$0xff] }
  0x11   :  { %182 = vmatpush.msra.mxu1 %v49_v27  ;;  %163 = vmatpush.msra.mxu0 %v32_v29  ;;  %v44_v47 = vld [vmem:[%s805_s1 + $0xa0] sm:$0xff]  ;;  %v27_v49 = vld [vmem:[%s805_s1 + $0x18] sm:$0xff]  ;;  %v58_v52 = vld [vmem:[%s805_s1 + $0x110] sm:$0xff] }
  0x12   :  { %223 = vmatpush.msra.mxu3 %v80_v30  ;;  %204 = vmatpush.msra.mxu2 %v63_v32  ;;  %v75_v50 = vld [vmem:[%s805_s1 + $0x198] sm:$0xff]  ;;  %v26_v53 = vld [vmem:[%s805_s1 + $0x10] sm:$0xff]  ;;  %v57_v56 = vld [vmem:[%s805_s1 + $0x108] sm:$0xff] }
  0x13   :  { %183 = vmatpush.msra.mxu1 %v48_v31  ;;  %164 = vmatpush.msra.mxu0 %v31_v33  ;;  %v43_v51 = vld [vmem:[%s805_s1 + $0x98] sm:$0xff]  ;;  %v74_v54 = vld [vmem:[%s805_s1 + $0x190] sm:$0xff]  ;;  %v25_v57 = vld [vmem:[%s805_s1 + $0x8] sm:$0xff] }
  0x14   :  { %224 = vmatpush.msra.mxu3 %v79_v34  ;;  %205 = vmatpush.msra.mxu2 %v62_v36  ;;  %v42_v55 = vld [vmem:[%s805_s1 + $0x90] sm:$0xff]  ;;  %v73_v58 = vld [vmem:[%s805_s1 + $0x188] sm:$0xff]  ;;  %v56_v60 = vld [vmem:[%s805_s1 + $0x100] sm:$0xff] }
  0x15   :  { %184 = vmatpush.msra.mxu1 %v47_v35  ;;  %165 = vmatpush.msra.mxu0 %v30_v37  ;;  %v41_v59 = vld [vmem:[%s805_s1 + $0x88] sm:$0xff]  ;;  %v24_v61 = vld [vmem:[%s805_s1] sm:$0xff]  ;;  %v135_v62 = vld [vmem:[%s805_s1 + $0x378] sm:$0xff] }
  0x16   :  { %225 = vmatpush.msra.mxu3 %v78_v38  ;;  %206 = vmatpush.msra.mxu2 %v61_v40  ;;  %v72_v63 = vld [vmem:[%s805_s1 + $0x180] sm:$0xff]  ;;  %v103_v0 = vld [vmem:[%s805_s1 + $0x278] sm:$0xff]  ;;  %v134_v2 = vld [vmem:[%s805_s1 + $0x370] sm:$0xff] }
  0x17   :  { %185 = vmatpush.msra.mxu1 %v46_v39  ;;  %166 = vmatpush.msra.mxu0 %v29_v41  ;;  %v151_v1 = vld [vmem:[%s805_s1 + $0x3f8] sm:$0xff]  ;;  %v40_v3 = vld [vmem:[%s805_s1 + $0x80] sm:$0xff]  ;;  %v102_v4 = vld [vmem:[%s805_s1 + $0x270] sm:$0xff] }
  0x18   :  { %226 = vmatpush.msra.mxu3 %v77_v42  ;;  %207 = vmatpush.msra.mxu2 %v60_v44  ;;  %v119_v5 = vld [vmem:[%s805_s1 + $0x2f8] sm:$0xff]  ;;  %v133_v6 = vld [vmem:[%s805_s1 + $0x368] sm:$0xff]  ;;  %v150_v7 = vld [vmem:[%s805_s1 + $0x3f0] sm:$0xff] }
  0x19   :  { %186 = vmatpush.msra.mxu1 %v45_v43  ;;  %167 = vmatpush.msra.mxu0 %v28_v45  ;;  %v101_v8 = vld [vmem:[%s805_s1 + $0x268] sm:$0xff]  ;;  %v118_v9 = vld [vmem:[%s805_s1 + $0x2f0] sm:$0xff]  ;;  %v132_v10 = vld [vmem:[%s805_s1 + $0x360] sm:$0xff] }
  0x1a   :  { %227 = vmatpush.msra.mxu3 %v76_v46  ;;  %208 = vmatpush.msra.mxu2 %v59_v48  ;;  %v149_v11 = vld [vmem:[%s805_s1 + $0x3e8] sm:$0xff]  ;;  %v100_v12 = vld [vmem:[%s805_s1 + $0x260] sm:$0xff]  ;;  %v131_v14 = vld [vmem:[%s805_s1 + $0x358] sm:$0xff] }
  0x1b   :  { %187 = vmatpush.msra.mxu1 %v44_v47  ;;  %168 = vmatpush.msra.mxu0 %v27_v49  ;;  %v117_v13 = vld [vmem:[%s805_s1 + $0x2e8] sm:$0xff]  ;;  %v148_v15 = vld [vmem:[%s805_s1 + $0x3e0] sm:$0xff]  ;;  %v99_v16 = vld [vmem:[%s805_s1 + $0x258] sm:$0xff] }
  0x1c   :  { %228 = vmatpush.msra.mxu3 %v75_v50  ;;  %209 = vmatpush.msra.mxu2 %v58_v52  ;;  %v116_v17 = vld [vmem:[%s805_s1 + $0x2e0] sm:$0xff]  ;;  %v130_v18 = vld [vmem:[%s805_s1 + $0x350] sm:$0xff]  ;;  %v147_v19 = vld [vmem:[%s805_s1 + $0x3d8] sm:$0xff] }
  0x1d   :  { %188 = vmatpush.msra.mxu1 %v43_v51  ;;  %169 = vmatpush.msra.mxu0 %v26_v53  ;;  %v98_v20 = vld [vmem:[%s805_s1 + $0x250] sm:$0xff]  ;;  %v115_v21 = vld [vmem:[%s805_s1 + $0x2d8] sm:$0xff]  ;;  %v129_v22 = vld [vmem:[%s805_s1 + $0x348] sm:$0xff] }
  0x1e   :  { %229 = vmatpush.msra.mxu3 %v74_v54  ;;  %210 = vmatpush.msra.mxu2 %v57_v56  ;;  %v146_v23 = vld [vmem:[%s805_s1 + $0x3d0] sm:$0xff]  ;;  %v97_v24 = vld [vmem:[%s805_s1 + $0x248] sm:$0xff]  ;;  %v128_v26 = vld [vmem:[%s805_s1 + $0x340] sm:$0xff] }
  0x1f   :  { %189 = vmatpush.msra.mxu1 %v42_v55  ;;  %170 = vmatpush.msra.mxu0 %v25_v57  ;;  %v114_v25 = vld [vmem:[%s805_s1 + $0x2d0] sm:$0xff]  ;;  %v145_v27 = vld [vmem:[%s805_s1 + $0x3c8] sm:$0xff]  ;;  %v96_v28 = vld [vmem:[%s805_s1 + $0x240] sm:$0xff] }
  0x20   :  { %230 = vmatpush.msra.mxu3 %v73_v58  ;;  %211 = vmatpush.msra.mxu2 %v56_v60  ;;  %v113_v29 = vld [vmem:[%s805_s1 + $0x2c8] sm:$0xff]  ;;  %v127_v30 = vld [vmem:[%s805_s1 + $0x338] sm:$0xff]  ;;  %v144_v31 = vld [vmem:[%s805_s1 + $0x3c0] sm:$0xff] }
  0x21   :  { %190 = vmatpush.msra.mxu1 %v41_v59  ;;  %171 = vmatpush.msra.mxu0 %v24_v61  ;;  %v95_v32 = vld [vmem:[%s805_s1 + $0x238] sm:$0xff]  ;;  %v112_v33 = vld [vmem:[%s805_s1 + $0x2c0] sm:$0xff]  ;;  %v126_v34 = vld [vmem:[%s805_s1 + $0x330] sm:$0xff] }
  0x22   :  { %276 = vmatpush.msrb.mxu2 %v135_v62  ;;  %231 = vmatpush.msra.mxu3 %v72_v63  ;;  %v143_v35 = vld [vmem:[%s805_s1 + $0x3b8] sm:$0xff]  ;;  %v94_v36 = vld [vmem:[%s805_s1 + $0x230] sm:$0xff]  ;;  %v125_v38 = vld [vmem:[%s805_s1 + $0x328] sm:$0xff] }
  0x23   :  { %236 = vmatpush.msrb.mxu0 %v103_v0  ;;  %191 = vmatpush.msra.mxu1 %v40_v3  ;;  %v111_v37 = vld [vmem:[%s805_s1 + $0x2b8] sm:$0xff]  ;;  %v142_v39 = vld [vmem:[%s805_s1 + $0x3b0] sm:$0xff]  ;;  %v93_v40 = vld [vmem:[%s805_s1 + $0x228] sm:$0xff] }
  0x24   :  { %296 = vmatpush.msrb.mxu3 %v151_v1  ;;  %277 = vmatpush.msrb.mxu2 %v134_v2  ;;  %v110_v41 = vld [vmem:[%s805_s1 + $0x2b0] sm:$0xff]  ;;  %v124_v42 = vld [vmem:[%s805_s1 + $0x320] sm:$0xff]  ;;  %v141_v43 = vld [vmem:[%s805_s1 + $0x3a8] sm:$0xff] }
  0x25   :  { %237 = vmatpush.msrb.mxu0 %v102_v4  ;;  %256 = vmatpush.msrb.mxu1 %v119_v5  ;;  %v18_v44 = vld [vmem:[%s807_s0 + $0x10] sm:$0xff]  ;;  %v92_v45 = vld [vmem:[%s805_s1 + $0x220] sm:$0xff]  ;;  %v109_v46 = vld [vmem:[%s805_s1 + $0x2a8] sm:$0xff] }
  0x26   :  { %278 = vmatpush.msrb.mxu2 %v133_v6  ;;  %297 = vmatpush.msrb.mxu3 %v150_v7  ;;  %v123_v47 = vld [vmem:[%s805_s1 + $0x318] sm:$0xff]  ;;  %v140_v48 = vld [vmem:[%s805_s1 + $0x3a0] sm:$0xff]  ;;  %v122_v53 = vld [vmem:[%s805_s1 + $0x310] sm:$0xff] }
  0x27   :  { %238 = vmatpush.msrb.mxu0 %v101_v8  ;;  %257 = vmatpush.msrb.mxu1 %v118_v9  ;;  %v16_v49 = vld [vmem:[%s807_s0] sm:$0xff]  ;;  %v19_v50 = vld [vmem:[%s807_s0 + $0x18] sm:$0xff]  ;;  %v17_v55 = vld [vmem:[%s807_s0 + $0x8] sm:$0xff] }
  0x28   :  { %279 = vmatpush.msrb.mxu2 %v132_v10  ;;  %298 = vmatpush.msrb.mxu3 %v149_v11  ;;  %v91_v51 = vld [vmem:[%s805_s1 + $0x218] sm:$0xff]  ;;  %v108_v52 = vld [vmem:[%s805_s1 + $0x2a0] sm:$0xff]  ;;  %v90_v56 = vld [vmem:[%s805_s1 + $0x210] sm:$0xff] }
  0x29   :  { %239 = vmatpush.msrb.mxu0 %v100_v12  ;;  %258 = vmatpush.msrb.mxu1 %v117_v13  ;;  %v139_v54 = vld [vmem:[%s805_s1 + $0x398] sm:$0xff]  ;;  %v121_v58 = vld [vmem:[%s805_s1 + $0x308] sm:$0xff]  ;;  %v138_v59 = vld [vmem:[%s805_s1 + $0x390] sm:$0xff] }
  0x2a   :  { %280 = vmatpush.msrb.mxu2 %v131_v14  ;;  %299 = vmatpush.msrb.mxu3 %v148_v15  ;;  %v107_v57 = vld [vmem:[%s805_s1 + $0x298] sm:$0xff]  ;;  %v89_v60 = vld [vmem:[%s805_s1 + $0x208] sm:$0xff]  ;;  %v106_v61 = vld [vmem:[%s805_s1 + $0x290] sm:$0xff] }
  0x2b   :  { %240 = vmatpush.msrb.mxu0 %v99_v16  ;;  %259 = vmatpush.msrb.mxu1 %v116_v17  ;;  %v120_v62 = vld [vmem:[%s805_s1 + $0x300] sm:$0xff]  ;;  %v137_v63 = vld [vmem:[%s805_s1 + $0x388] sm:$0xff]  ;;  %v22_v0 = vld [vmem:[%s807_s0 + $0x30] sm:$0xff] }
  0x2c   :  { %281 = vmatpush.msrb.mxu2 %v130_v18  ;;  %300 = vmatpush.msrb.mxu3 %v147_v19  ;;  %v88_v1 = vld [vmem:[%s805_s1 + $0x200] sm:$0xff]  ;;  %v105_v2 = vld [vmem:[%s805_s1 + $0x288] sm:$0xff]  ;;  %v23_v5 = vld [vmem:[%s807_s0 + $0x38] sm:$0xff] }
  0x2d   :  { %241 = vmatpush.msrb.mxu0 %v98_v20  ;;  %260 = vmatpush.msrb.mxu1 %v115_v21  ;;  %v136_v3 = vld [vmem:[%s805_s1 + $0x380] sm:$0xff]  ;;  %v21_v7 = vld [vmem:[%s807_s0 + $0x28] sm:$0xff] }
  0x2e   :  { %282 = vmatpush.msrb.mxu2 %v129_v22  ;;  %301 = vmatpush.msrb.mxu3 %v146_v23  ;;  %v20_v4 = vld [vmem:[%s807_s0 + $0x20] sm:$0xff]  ;;  %s357_s0 = smov 1  }
  0x2f   :  { %242 = vmatpush.msrb.mxu0 %v97_v24  ;;  %261 = vmatpush.msrb.mxu1 %v114_v25  ;;  %v104_v6 = vld [vmem:[%s805_s1 + $0x280] sm:$0xff]  ;;  %s359_s1 = smov 127  }
  0x30   :  { %283 = vmatpush.msrb.mxu2 %v128_v26  ;;  %302 = vmatpush.msrb.mxu3 %v145_v27  ;;  %v352_v8 = vld [vmem:[%s806_s2] ss:$0 sm:$0xff] }
  0x31   :  { %243 = vmatpush.msrb.mxu0 %v96_v28  ;;  %262 = vmatpush.msrb.mxu1 %v113_v29 }
  0x32   :  { %284 = vmatpush.msrb.mxu2 %v127_v30  ;;  %303 = vmatpush.msrb.mxu3 %v144_v31 }
  0x33   :  { %244 = vmatpush.msrb.mxu0 %v95_v32  ;;  %263 = vmatpush.msrb.mxu1 %v112_v33  ;;  %v358_v32 = vmov 0  }
  0x34   :  { %285 = vmatpush.msrb.mxu2 %v126_v34  ;;  %304 = vmatpush.msrb.mxu3 %v143_v35 }
  0x35   :  { %245 = vmatpush.msrb.mxu0 %v94_v36  ;;  %264 = vmatpush.msrb.mxu1 %v111_v37 }
  0x36   :  { %286 = vmatpush.msrb.mxu2 %v125_v38  ;;  %305 = vmatpush.msrb.mxu3 %v142_v39 }
  0x37   :  { %246 = vmatpush.msrb.mxu0 %v93_v40  ;;  %265 = vmatpush.msrb.mxu1 %v110_v41 }
  0x38   :  { %287 = vmatpush.msrb.mxu2 %v124_v42  ;;  %306 = vmatpush.msrb.mxu3 %v141_v43 }
  0x39   :  { %212 = vmatmul.f32.vlgmr.msra.gmra.mxu2 %v18_v44  ;;  %247 = vmatpush.msrb.mxu0 %v92_v45 }
  0x3a   :  { %266 = vmatpush.msrb.mxu1 %v109_v46  ;;  %288 = vmatpush.msrb.mxu2 %v123_v47 }
  0x3b   :  { %307 = vmatpush.msrb.mxu3 %v140_v48  ;;  %172 = vmatmul.f32.vlgmr.msra.gmra.mxu0 %v16_v49 }
  0x3c   :  { %232 = vmatmul.f32.vlgmr.msra.gmra.mxu3 %v19_v50  ;;  %248 = vmatpush.msrb.mxu0 %v91_v51 }
  0x3d   :  { %267 = vmatpush.msrb.mxu1 %v108_v52  ;;  %289 = vmatpush.msrb.mxu2 %v122_v53 }
  0x3e   :  { %308 = vmatpush.msrb.mxu3 %v139_v54  ;;  %192 = vmatmul.f32.vlgmr.msra.gmra.mxu1 %v17_v55 }
  0x3f   :  { %249 = vmatpush.msrb.mxu0 %v90_v56  ;;  %268 = vmatpush.msrb.mxu1 %v107_v57 }
  0x40   :  { %290 = vmatpush.msrb.mxu2 %v121_v58  ;;  %309 = vmatpush.msrb.mxu3 %v138_v59 }
  0x41   :  { %250 = vmatpush.msrb.mxu0 %v89_v60  ;;  %269 = vmatpush.msrb.mxu1 %v106_v61 }
  0x42   :  { %291 = vmatpush.msrb.mxu2 %v120_v62  ;;  %310 = vmatpush.msrb.mxu3 %v137_v63 }
  0x43   :  { %292 = vmatmul.f32.vlgmr.msrb.gmra.mxu2 %v22_v0  ;;  %251 = vmatpush.msrb.mxu0 %v88_v1 }
  0x44   :  { %270 = vmatpush.msrb.mxu1 %v105_v2  ;;  %311 = vmatpush.msrb.mxu3 %v136_v3 }
  0x45   :  { %252 = vmatmul.f32.vlgmr.msrb.gmra.mxu0 %v20_v4  ;;  %312 = vmatmul.f32.vlgmr.msrb.gmra.mxu3 %v23_v5 }
  0x46   :  { %271 = vmatpush.msrb.mxu1 %v104_v6 }
  0x47   :  { %272 = vmatmul.f32.vlgmr.msrb.gmra.mxu1 %v21_v7 }
  0xb8   :  { %v173_v9 = vpop.f32.mrf.mxu0 }
  0xb9   :  { %v174_v10 = vadd.f32 %v352_v8, %v173_v9 }
  0xbb   :  { %v193_v11 = vpop.f32.mrf.mxu1 }
  0xbc   :  { %v194_v12 = vadd.f32 %v193_v11, %v174_v10  ;;  %v213_v13 = vpop.f32.mrf.mxu2 }
  0xbe   :  { %v214_v14 = vadd.f32 %v213_v13, %v194_v12 }
  0xbf   :  { %v233_v15 = vpop.f32.mrf.mxu3 }
  0xc0   :  { %v234_v16 = vadd.f32 %v233_v15, %v214_v14 }
  0xc2   :  { %v253_v17 = vpop.f32.mrf.mxu0 }
  0xc3   :  { %v254_v18 = vadd.f32 %v253_v17, %v234_v16 }
  0xc4   :  { %v273_v19 = vpop.f32.mrf.mxu1 }
  0xc5   :  { %v274_v20 = vadd.f32 %v273_v19, %v254_v18 }
  0xc6   :  { %v293_v21 = vpop.f32.mrf.mxu2 }
  0xc7   :  { %v294_v22 = vadd.f32 %v293_v21, %v274_v20 }
  0xc8   :  { %v313_v23 = vpop.f32.mrf.mxu3 }
  0xc9   :  { %v314_v24 = vadd.f32 %v313_v23, %v294_v22 }
  0xcb   :  { %v317_v25 = vsel %vm316_vm0, %v314_v24, -inf }
  0xcc   :  { %318 = vmax.xlane.f32.xlu0 %v317_v25 }
  0xe0   :  { %332 = vrot.lane.b32.xlu0 %v314_v24, %s357_s0 }
 0x13f   :  { %v319_v26 = vpop.xlane.xlu0 %318 }
 0x140   :  { %v320_v27 = vsub.f32 %v314_v24, %v319_v26 }
 0x142   :  { %v321_v28 = vmul.f32 1.442695, %v320_v27 }
 0x144   :  { %353 = vpow2.f32 %v321_v28 }
 0x14a   :  { %v354_v29 = vpop.eup %353 }
 0x14b   :  { %v323_v30 = vsel %vm316_vm0, %v354_v29, 0.0 }
 0x14c   :  { %324 = vadd.xlane.f32.xlu1 %v323_v30 }
 0x152   :  { %v333_v31 = vpop.permute.xlu0 %332 }
 0x153   :  { %vm335_vm1 = vcmp.gt.f32.partialorder %v314_v24, %v333_v31 }
 0x154   :  { %v336_v33 = vsel %vm335_vm1, 1, %v358_v32 }
 0x165   :  { %337 = vrot.lane.b32.xlu1 %v336_v33, %s359_s1 }
 0x1bf   :  { %v325_v34 = vpop.xlane.xlu1 %324 }
 0x1c0   :  { %355 = vlog2.f32 %v325_v34 }
 0x1c6   :  { %v356_v35 = vpop.eup %355 }
 0x1c7   :  { %v327_v36 = vmul.f32 0.6931472, %v356_v35 }
 0x1c9   :  { %v328_v37 = vadd.f32 %v327_v36, %v319_v26 }
 0x1cb   :  { %v329_v38 = vsub.f32 %v314_v24, %v328_v37 }
 0x1cd   :  { %330 = vst.msk [vmem:[%s808_s3] sm:$0xff] %vm316_vm0, %v329_v38 }
 0x1d7   :  { %v338_v39 = vpop.permute.xlu1 %337 }
 0x1d8   :  { %340 = vst.msk [vmem:[%s809_s4] sm:$0xff] %vm339_vm2, %v338_v39 }

</bundles_post_ra>
